<compile_context>
chip_gen: v7x
topology: tpu7x:2x2x1
jax: 0.10.0
libtpu: 0.0.40
codegen_flags: <defaults>
</compile_context>

<pallas_src>
import functools

import jax
import jax.numpy as jnp
from jax.experimental import pallas as pl
from jax.experimental.pallas import tpu as pltpu


def _round_up(x, m):
    return (x + m - 1) // m * m


# Live pipeline buffers (2 double-buffered input blocks + 2 double-buffered
# output blocks) are kept under this budget: fits v5e's 16 MiB scoped-VMEM
# default and leaves headroom on v7x's 64 MiB physical VMEM.
_PIPELINE_BUDGET_BYTES = 16 * 1024 * 1024
_VMEM_LIMIT_BYTES = 32 * 1024 * 1024


def _copy_kernel(x_ref, o_ref):
    # The crop already happened in the input DMA window (element-offset
    # BlockSpec), so the body is a straight copy of the cropped block.
    o_ref[...] = x_ref[...]


def _slice_kernel(num, h_out, w_out, x_ref, o_ref):
    # Fallback path: full-window input block, crop via an in-VMEM slice.
    o_ref[...] = x_ref[:, num:num + h_out, num:num + w_out]


def _pick_block(nc, h, w, h_out, w_out, itemsize):
    """Byte-budgeted block size along the fused N*C axis (ragged last block OK)."""
    # Conservative: assume the full (padded) input window is resident, so the
    # same block size is safe for both the element-DMA path and the fallback.
    in_bytes = _round_up(h, 8) * _round_up(w, 128) * itemsize
    out_bytes = _round_up(h_out, 8) * _round_up(w_out, 128) * itemsize
    per_slice = 2 * (in_bytes + out_bytes)  # double-buffered input + output
    cb = max(1, _PIPELINE_BUDGET_BYTES // per_slice)
    cb = min(cb, nc)
    # Keep a few grid steps so v7x's two TensorCores both get work and the
    # pipeline can overlap step i+1's input DMA with step i-1's writeback.
    min_steps = min(nc, 4)
    cb = min(cb, pl.cdiv(nc, min_steps))
    return max(cb, 1)


def _crop_call(x3, num, h_out, w_out, cb, use_element_dma):
    nc, h, w = x3.shape
    grid = (pl.cdiv(nc, cb),)
    out_shape = jax.ShapeDtypeStruct((nc, h_out, w_out), x3.dtype)
    # Output block spans the full (h_out, w_out) extents -> satisfies the
    # (8,128)-or-full-dim rule for arbitrary crop sizes.
    out_spec = pl.BlockSpec((cb, h_out, w_out), lambda i: (i, 0, 0))

    if use_element_dma:
        # Crop inside the DMA: element offsets (num, num) on the spatial dims,
        # so only the cropped window ever leaves HBM.
        in_spec = pl.BlockSpec(
            (cb, pl.Element(h_out), pl.Element(w_out)),
            lambda i: (i, num, num))
        kernel = _copy_kernel
    else:
        in_spec = pl.BlockSpec((cb, h, w), lambda i: (i, 0, 0))
        kernel = functools.partial(_slice_kernel, num, h_out, w_out)

    # NOTE: pipeline_mode=pl.Buffered(3) on in_spec is a possible further
    # tweak if per-step DMA issue latency is still exposed; default depth 2
    # keeps the VMEM footprint small on v7x.
    return pl.pallas_call(
        kernel,
        out_shape=out_shape,
        grid=grid,
        in_specs=[in_spec],
        out_specs=out_spec,
        compiler_params=pltpu.CompilerParams(
            dimension_semantics=("parallel",),
            vmem_limit_bytes=_VMEM_LIMIT_BYTES),
    )(x3)


def crop2d(x, num):
    """Pallas equivalent of Crop2d(num).forward(x) for NCHW inputs.

    `num` must be a static Python int (as in the nn.Module attribute).
    """
    if num == 0:
        # PyTorch returns the input tensor unchanged.
        return x

    n, c, h, w = x.shape
    h_out, w_out = h - 2 * num, w - 2 * num
    if h_out <= 0 or w_out <= 0:
        raise ValueError(f"crop num={num} too large for spatial dims {(h, w)}")

    nc = n * c
    x3 = x.reshape(nc, h, w)  # free for a contiguous NCHW array
    cb = _pick_block(nc, h, w, h_out, w_out, jnp.dtype(x.dtype).itemsize)

    try:
        # Preferred path: crop in the input DMA (element-offset window).
        out3 = _crop_call(x3, num, h_out, w_out, cb, use_element_dma=True)
    except Exception:  # noqa: BLE001  Mosaic build w/o unaligned element-offset DMA
        # Graceful degradation: full-window DMA + in-kernel slice (known good).
        out3 = _crop_call(x3, num, h_out, w_out, cb, use_element_dma=False)
    return out3.reshape(n, c, h_out, w_out)


if __name__ == "__main__":
    key = jax.random.PRNGKey(0)
    # PyTorch-style NCHW input: batch=2, channels=4, spatial=16x16.
    x = jax.random.normal(key, (2, 4, 16, 16), jnp.float32)

    ok = True
    for num in (0, 1, 2):
        out = jax.block_until_ready(crop2d(x, num))
        ref = x if num == 0 else x[:, :, num:-num, num:-num]
        if out.shape != ref.shape or not bool(jnp.array_equal(out, ref)):
            ok = False
            diff = float(jnp.max(jnp.abs(
                out.astype(jnp.float32) - ref.astype(jnp.float32)))) \
                if out.shape == ref.shape else float("nan")
            print(f"MISMATCH at num={num}: got shape {out.shape}, "
                  f"want {ref.shape}, maxdiff={diff}")

    if ok:
        print("KERNEL_OK")
</pallas_src>

<mosaic_0001>
module attributes {stable_mosaic.version = 11 : i64} {
  func.func @_slice_kernel(%arg0: i32, %arg1: memref<2x16x16xf32, #tpu.memory_space<vmem>>, %arg2: memref<2x14x14xf32, #tpu.memory_space<vmem>>) attributes {dimension_semantics = [#tpu.dimension_semantics<parallel>], iteration_bounds = array<i64: 4>, scalar_prefetch = 0 : i64, scratch_operands = 0 : i64, tpu.core_type = #tpu.core_type<tc>, window_params = [{transform_indices = @transform_0, window_bounds = array<i64: 2, 16, 16>}, {transform_indices = @transform_1, window_bounds = array<i64: 2, 14, 14>}]} {
    %c0 = arith.constant 0 : index
    %c1 = arith.constant 1 : index
    %c1_0 = arith.constant 1 : index
    %0 = vector.load %arg1[%c0, %c1, %c1_0] : memref<2x16x16xf32, #tpu.memory_space<vmem>>, vector<2x14x14xf32>
    %c0_1 = arith.constant 0 : index
    %c0_2 = arith.constant 0 : index
    %c0_3 = arith.constant 0 : index
    %1 = vector.load %arg2[%c0_1, %c0_2, %c0_3] : memref<2x14x14xf32, #tpu.memory_space<vmem>>, vector<2x14x14xf32>
    tpu.vector_store %arg2[%c0_1, %c0_2, %c0_3], %0 {strides = array<i32>} : memref<2x14x14xf32, #tpu.memory_space<vmem>>, vector<2x14x14xf32>,
    return
  }
  func.func @transform_0(%arg0: i32) -> (i32, i32, i32) {
    %c0_i32 = arith.constant 0 : i32
    %c0_i32_0 = arith.constant 0 : i32
    %c0_i32_1 = arith.constant 0 : i32
    return %arg0, %c0_i32, %c0_i32_0 : i32, i32, i32
  }
  func.func @transform_1(%arg0: i32) -> (i32, i32, i32) {
    %c0_i32 = arith.constant 0 : i32
    %c0_i32_0 = arith.constant 0 : i32
    %c0_i32_1 = arith.constant 0 : i32
    return %arg0, %c0_i32, %c0_i32_0 : i32, i32, i32
  }
}

</mosaic_0001>

<bundles_post_ra>
// kernel: tpu_custom_call.1
= control target key start
LH: loop header
LB: loop body
LE: loop exit
PB: predicated region body
PF: predicated region fallthrough
CT: control target
= control target key end

     0   :  { %6 = vsyncpa [#allocation3], 0  ;;  %s484_s0 = inlined_call_operand.hbm [shape: f32[8,16,16], index: 0, kind: input, shape index: {}]   ;;  %s485_s1 = inlined_call_operand.vmem [shape: f32[8,14,14], index: 1, kind: output, shape index: {}]  }
   0x1   :  { %8 = vsyncpa [#allocation3 + $0x1], 0  ;;  %s377_s6 = smov 0   ;;  %s379_s7 = smov 0  }
   0x2   :  { %s381_s8 = smov 0   ;;  %s383_s9 = smov 0  }
   0x3 LB: > { %s237_s10 = sadd.s32 4294967295, %s361_s9   ;;  %s397_s11 = sadd.s32 1, %s361_s9   ;;  %s361_s9 = sphi %s383_s9, %s492_s9   ;;  %s357_s8 = sphi %s381_s8, %s491_s8   ;;  %s353_s7 = sphi %s379_s7, %s490_s7   ;;  %s349_s6 = sphi %s377_s6, %s489_s6  }
   0x4   : > { %s18_s12 = ssub.s32 %s361_s9, %s397_s11  ;;  %s21_s13 = sadd.s32 1, %s357_s8 }
   0x5   : > { %p19_p0 = scmp.eq.s32.totalorder %s18_s12, 0  ;;  %p28_p1 = scmp.ne.s32.totalorder %s357_s8, %s353_s7 }
   0x6   : > { %p29_p2 = scmp.eq.s32.totalorder %s361_s9, 0  ;;  %p34_p3 = scmp.ne.s32.totalorder %s353_s7, %s349_s6 }
   0x7   : > { %s407_s14 = scalar_select %p19_p0, %s357_s8, %s21_s13  }
   0x8   : > { %p30_p4 = por %p29_p2, %p28_p1  ;;  %p35_p5 = scmp.eq.s32.totalorder %s237_s10, 0 }
   0x9   : > { %p261_p6 = scmp.lt.s32.totalorder %s361_s9, 4  ;;  %s84_s16 = sand.u32 1, %s357_s8  }
   0xa   : > { %p412_p7 = por %p35_p5, %p34_p3  ;;  %s241_s17 = sshll.u32 %s84_s16, 5 }
   0xb   : > { %s253_s18 = sshll.u32 %s361_s9, 9  ;;  %s88_s22 = scalar_lea.vmem [#allocation2], %s241_s17 }
   0xc   : > { %s421_s21 = scalar_lea.hbm %s484_s0, %s253_s18  ;;  %s96_s23 = sshll.u32 %s88_s22, 4  ;;  %s423_s23 = int_to_ptr.vmem [resolvable:$true] %s96_s23 }
   0xd   : > { %p425_p8 = pnand %p261_p6, %p30_p4  ;;  %s430_s25 = scalar_lea.sflag [#allocation3], %s84_s16 }
   0xe   : > { %s297_s26 = scalar_lea.hbm %s421_s21, 512  ;;  %s302_s29 = scalar_lea.hbm %s484_s0, 2048 }
   0xf   : > { %p298_p10 = scmp.ne.s32.totalorder %s421_s21, %s297_s26  ;;  %p299_p11 = pneg %p425_p8 }
  0x10   : > { %p303_p0 = scmp.lt.u32.totalorder %s421_s21, %s484_s0  ;;  %p304_p1 = scmp.lt.u32.totalorder %s302_s29, %s297_s26 }
  0x11   : > { %p300_p12 = pnand %p299_p11, %p298_p10  ;;  %p306_p3 = scmp.lt.u32.totalorder %s297_s26, %s421_s21 }
  0x12   : > { %p305_p2 = por %p304_p1, %p303_p0 }
  0x13   : > { %p301_p13 = pneg %p300_p12 }
  0x14   : > { %p307_p4 = por %p306_p3, %p305_p2 }
  0x16   : > { %p308_p5 = pnand %p307_p4, %p301_p13 }
  0x18   : > { %311 = shalt.err (!%p308_p5)
}
  0x19   : > { %s312_s3 = scalar_lea.vmem %s423_s23, 512  ;;  %s363_s4 = smov [#allocation2]  }
  0x1a   : > { %p313_p6 = scmp.ne.s32.totalorder %s423_s23, %s312_s3  ;;  %s317_s5 = sshll.u32 %s363_s4, 4  ;;  %s318_s5 = int_to_ptr.vmem [resolvable:$false] %s317_s5 }
  0x1b   : > { %s319_s6 = scalar_lea.vmem %s318_s5, 1024  ;;  %p320_p9 = scmp.lt.s32.totalorder %s423_s23, %s318_s5 }
  0x1c   : > { %p315_p10 = pnand %p313_p6, %p299_p11  ;;  %p321_p0 = scmp.lt.s32.totalorder %s319_s6, %s312_s3 }
  0x1e   : > { %p316_p12 = pneg %p315_p10  ;;  %p322_p1 = por %p321_p0, %p320_p9 }
  0x20   : > { %p323_p2 = pnand %p322_p1, %p316_p12 }
  0x22   : > { %326 = shalt.err (!%p323_p2)
}
  0x23   : > { %s364_s12 = smov 128   ;;  %s365_s13 = smov 8  }
  0x24   : > { %260 = dma.hbm_to_vmem [thread:$0]  (!%p425_p8), %s421_s21, 512, %s423_s23, %s430_s25, %s364_s12, %s364_s12, %s365_s13  }
  0x25   : > { %p104_p11 = scmp.lt.s32.totalorder %s361_s9, 5  ;;  %p488_p13 = scmp.ge.s32.totalorder %s361_s9, 1 }
  0x27   : > { %p105_p3 = pnand %p488_p13, %p104_p11 }
  0x28   : > { %s110_s16 = sand.u32 (!%p105_p3), 1, %s353_s7  }
  0x29   : > { %108 = sbr.rel (%p105_p3) target bundleno = 170 (0xaa), region = 24  ;;  %s246_s17 = sshll.u32 (!%p105_p3), %s110_s16, 5 }
  0x2a   : > { %s111_s18 = scalar_lea.sflag (!%p105_p3), [#allocation3], %s110_s16  ;;  %s114_s19 = scalar_lea.vmem (!%p105_p3), [#allocation2], %s246_s17 }
  0x30   : > { %344 = dma.done.wait (%p412_p7), %s111_s18, 512  }
  0x31   : > { %346 = vsyncadd (%p412_p7), %s111_s18, 4294966784  ;;  %v142_v0 = vld [vmem:[%s114_s19 + $0x1] sm:$0xff]  ;;  %v144_v1 = vld [vmem:[%s114_s19 + $0x11] sm:$0xff]  ;;  %s366_s20 = smov 127   ;;  %s247_s21 = sshll.u32 %s237_s10, 1  ;;  %vm162_vm0 = vcmask 113664  }
  0x32   : > { %150 = vrot.lane.b32.xlu0 %v142_v0, %s366_s20  ;;  %154 = vrot.lane.b32.xlu1 %v144_v1, %s366_s20  ;;  %v143_v2 = vld [vmem:[%s114_s19 + $0x9] sm:$0x3f]  ;;  %v145_v3 = vld [vmem:[%s114_s19 + $0x19] sm:$0x3f]  ;;  %p136_p8 = scmp.lt.s32.totalorder %s247_s21, 7  ;;  %vm164_vm1 = vcmask 111616  }
  0x34   : > { %s494_s21 = smov (!%p136_p8, %s247_s21), 7 }
  0x35   : > { %s254_s22 = sshll.u32 %s494_s21, 4 }
  0x36   : > { %152 = vrot.lane.b32.xlu0 %v143_v2, %s366_s20  ;;  %156 = vrot.lane.b32.xlu1 %v145_v3, %s366_s20  ;;  %s140_s15 = scalar_lea.vmem %s485_s1, %s254_s22 }
  0xa4   : > { %v151_v4 = vpop.permute.xlu0 %150  ;;  %v155_v5 = vpop.permute.xlu1 %154 }
  0xa5   : > { %163 = vst.msk [vmem:[%s140_s15] sm:$0xff] %vm162_vm0, %v151_v4  ;;  %166 = vst.msk [vmem:[%s140_s15 + $0x10] sm:$0xff] %vm162_vm0, %v155_v5 }
  0xa8   : > { %v153_v6 = vpop.permute.xlu0 %152  ;;  %v157_v7 = vpop.permute.xlu1 %156 }
  0xa9   : > { %165 = vst.msk [vmem:[%s140_s15 + $0x8] sm:$0x3f] %vm164_vm1, %v153_v6  ;;  %167 = vst.msk [vmem:[%s140_s15 + $0x18] sm:$0x3f] %vm164_vm1, %v157_v7 }
  0xaa PF: > { %p11_p7 = scmp.ge.s32.totalorder %s397_s11, 6   ;;  %s489_s6 = smov %s353_s7 }
  0xab   : > { %s490_s7 = smov %s357_s8  ;;  %s491_s8 = smov %s407_s14 }
  0xac   : > { %s492_s9 = smov %s397_s11  ;;  %13 = sbr.rel (!%p11_p7) target bundleno = 3 (0x3), region = 64 }
  0xb3   :  { %192 = vsyncpa [#allocation3], 1 }
  0xb4   :  { %194 = vsyncpa [#allocation3 + $0x1], 1 }

</bundles_post_ra>
